<compile_context>
chip_gen: v7x
topology: tpu7x:2x2x1
jax: 0.10.0
libtpu: 0.0.40
codegen_flags: <defaults>
</compile_context>

<pallas_src>
import functools

import jax
import jax.numpy as jnp
from jax.experimental import pallas as pl
from jax.experimental.pallas import tpu as pltpu


# --------------------------------------------------------------------------- #
# Fused kernel: block-diag 1x1 conv (MXU) + global-mean pool + per-row scale.
# --------------------------------------------------------------------------- #
def _fused_kernel(x_ref, w_ref, b_ref, out_ref):
    # x_ref : (B*Cin,  HW)        activations, lane-dense on HW
    # w_ref : (B*Cout, B*Cin)     block-diagonal 1x1-conv weight (f32)
    # b_ref : (B*Cout, 1)         bias column (f32)
    # out_ref:(B*Cout, HW)
    x = x_ref[...].astype(jnp.float32)       # upcast on load inside VMEM
    w = w_ref[...]
    b = b_ref[...]

    # 1x1 conv for all batches at once: one small MXU contraction.
    y = jnp.dot(w, x, preferred_element_type=jnp.float32) + b   # (B*Cout, HW)

    # adaptive_avg_pool2d(., 1) == per-(batch, channel) spatial mean
    # (single lane reduce on the XLU).
    m = jnp.mean(y, axis=-1, keepdims=True)                     # (B*Cout, 1)

    # Grouped depthwise 1x1 conv with the pooled filter == per-row scale.
    # (The F.pad in the original forward is dead code -> intentionally absent.)
    out_ref[...] = (y * m).astype(out_ref.dtype)


# --------------------------------------------------------------------------- #
# Module wrapper
# --------------------------------------------------------------------------- #
class FilterGeneratingNetwork:
    def __init__(self, in_channels, out_channels, filter_size, key):
        self.in_channels = in_channels
        self.out_channels = out_channels
        self.filter_size = filter_size
        # nn.Conv2d default init: U(-1/sqrt(fan_in), +1/sqrt(fan_in)).
        kw, kb = jax.random.split(key)
        bound = 1.0 / (in_channels ** 0.5)
        self.weight = jax.random.uniform(
            kw, (out_channels, in_channels), jnp.float32, -bound, bound
        )
        self.bias = jax.random.uniform(
            kb, (out_channels,), jnp.float32, -bound, bound
        )

    def __call__(self, x):
        B, Cin, H, W = x.shape
        assert Cin == self.in_channels
        Cout = self.out_channels
        # Same constraint as the PyTorch original: the final .view(b, c, h, w)
        # is only shape-consistent when filter_size == 1.
        assert self.filter_size == 1, (
            "FilterGeneratingNetwork requires filter_size == 1"
        )

        HW = H * W
        # Fold batch into rows -> one dense (B*Cin, HW) slab, no dtype cast.
        x_flat = x.reshape(B * Cin, HW)
        # Block-diagonal weight so one MXU matmul handles every batch, plus a
        # bias column replicated per batch.
        w_big = jnp.kron(jnp.eye(B, dtype=jnp.float32), self.weight)  # (B*Cout, B*Cin)
        b_big = jnp.tile(self.bias, B)[:, None]                       # (B*Cout, 1)

        out_flat = pl.pallas_call(
            _fused_kernel,
            out_shape=jax.ShapeDtypeStruct((B * Cout, HW), x.dtype),
            # Single invocation (grid=()): whole arrays live in VMEM, one
            # coalesced DMA in, one unmasked DMA out.
            in_specs=[
                pl.BlockSpec(memory_space=pltpu.MemorySpace.VMEM),
                pl.BlockSpec(memory_space=pltpu.MemorySpace.VMEM),
                pl.BlockSpec(memory_space=pltpu.MemorySpace.VMEM),
            ],
            out_specs=pl.BlockSpec(memory_space=pltpu.MemorySpace.VMEM),
        )(x_flat, w_big, b_big)

        return out_flat.reshape(B, Cout, H, W)


# --------------------------------------------------------------------------- #
# Pure-JAX reference (mirrors the PyTorch forward for fs == 1).
# --------------------------------------------------------------------------- #
def _reference(x, weight, bias):
    y = jnp.einsum("bihw,oi->bohw", x, weight) + bias[None, :, None, None]
    m = jnp.mean(y, axis=(2, 3), keepdims=True)   # adaptive_avg_pool2d(., 1)
    return y * m                                   # grouped depthwise 1x1 conv


if __name__ == "__main__":
    key = jax.random.PRNGKey(0)
    kx, kp = jax.random.split(key)

    B, Cin, H, W = 2, 4, 16, 16
    Cout = 4
    filter_size = 1  # the only configuration the original forward supports

    x = jax.random.normal(kx, (B, Cin, H, W), dtype=jnp.float32)
    net = FilterGeneratingNetwork(Cin, Cout, filter_size, kp)

    out = net(x)
    out = jax.block_until_ready(out)

    ref = _reference(x, net.weight, net.bias)
    assert out.shape == (B, Cout, H, W), out.shape
    assert jnp.allclose(out, ref, rtol=1e-3, atol=1e-3), "mismatch vs reference"

    print("KERNEL_OK")
</pallas_src>

<mosaic_0001>
module attributes {stable_mosaic.version = 11 : i64} {
  func.func @_fused_kernel(%arg0: memref<8x256xf32, #tpu.memory_space<vmem>>, %arg1: memref<8x8xf32, #tpu.memory_space<vmem>>, %arg2: memref<8x1xf32, #tpu.memory_space<vmem>>, %arg3: memref<8x256xf32, #tpu.memory_space<vmem>>) attributes {dimension_semantics = [], scalar_prefetch = 0 : i64, scratch_operands = 0 : i64, tpu.core_type = #tpu.core_type<tc>} {
    %c0 = arith.constant 0 : index
    %c0_0 = arith.constant 0 : index
    %0 = vector.load %arg0[%c0, %c0_0] : memref<8x256xf32, #tpu.memory_space<vmem>>, vector<8x256xf32>
    %c0_1 = arith.constant 0 : index
    %c0_2 = arith.constant 0 : index
    %1 = vector.load %arg1[%c0_1, %c0_2] : memref<8x8xf32, #tpu.memory_space<vmem>>, vector<8x8xf32>
    %c0_3 = arith.constant 0 : index
    %c0_4 = arith.constant 0 : index
    %2 = vector.load %arg2[%c0_3, %c0_4] : memref<8x1xf32, #tpu.memory_space<vmem>>, vector<8x1xf32>
    %cst = arith.constant dense<0.000000e+00> : vector<8x256xf32>
    %3 = tpu.matmul %1, %0, %cst {dimension_numbers = #tpu.dot_dimension_numbers<[1], [0], [0], [1], [0, 0, 1, 1], [], []>} : vector<8x8xf32>, vector<8x256xf32>, vector<8x256xf32> -> vector<8x256xf32>
    %4 = vector.broadcast %2 : vector<8x1xf32> to vector<8x256xf32>
    %5 = arith.addf %3, %4 : vector<8x256xf32>
    %cst_5 = arith.constant dense<0.000000e+00> : vector<8xf32>
    %6 = vector.multi_reduction <add>, %5, %cst_5 [1] : vector<8x256xf32> to vector<8xf32>
    %7 = vector.shape_cast %6 : vector<8xf32> to vector<8x1xf32>
    %cst_6 = arith.constant 2.560000e+02 : f32
    %8 = vector.broadcast %cst_6 : f32 to vector<8x1xf32>
    %9 = arith.divf %7, %8 : vector<8x1xf32>
    %10 = vector.broadcast %9 : vector<8x1xf32> to vector<8x256xf32>
    %11 = arith.mulf %5, %10 : vector<8x256xf32>
    %c0_7 = arith.constant 0 : index
    %c0_8 = arith.constant 0 : index
    %12 = vector.load %arg3[%c0_7, %c0_8] : memref<8x256xf32, #tpu.memory_space<vmem>>, vector<8x256xf32>
    tpu.vector_store %arg3[%c0_7, %c0_8], %11 {strides = array<i32>} : memref<8x256xf32, #tpu.memory_space<vmem>>, vector<8x256xf32>,
    return
  }
}

</mosaic_0001>

<bundles_post_ra>
// kernel: tpu_custom_call.1
= control target key start
LH: loop header
LB: loop body
LE: loop exit
PB: predicated region body
PF: predicated region fallthrough
CT: control target
= control target key end

     0   :  { %8 = vsyncpa [#allocation3], 0  ;;  %s243_s0 = inlined_call_operand.hbm [shape: f32[8,256], index: 0, kind: input, shape index: {}]   ;;  %s244_s1 = inlined_call_operand.vmem [shape: f32[8,8], index: 1, kind: input, shape index: {}]   ;;  %s245_s2 = inlined_call_operand.vmem [shape: f32[8,1], index: 2, kind: input, shape index: {}]   ;;  %s246_s3 = inlined_call_operand.hbm [shape: f32[8,256], index: 3, kind: output, shape index: {}]  }
   0x1   :  { %9 = vsyncpa [#allocation4], 0  ;;  %s189_s12 = smov [#allocation2]   ;;  %s141_s16 = scalar_lea.hbm %s243_s0, 256 }
   0x2   :  { %s16_s13 = sshll.u32 %s189_s12, 4  ;;  %p142_p0 = scmp.ne.s32.totalorder %s243_s0, %s141_s16  ;;  %s17_s13 = int_to_ptr.vmem [resolvable:$true] %s16_s13 }
   0x3   :  { %p145_p1 = scmp.lt.u32.totalorder %s141_s16, %s243_s0 }
   0x5   :  { %p147_p2 = pnand %p145_p1, %p142_p0 }
   0x7   :  { %150 = shalt.err (!%p147_p2)
}
   0x8   :  { %s151_s21 = scalar_lea.vmem %s17_s13, 256  ;;  %p156_p4 = scmp.lt.s32.totalorder %s17_s13, %s17_s13 }
   0x9   :  { %p152_p3 = scmp.ne.s32.totalorder %s17_s13, %s151_s21  ;;  %p157_p5 = scmp.lt.s32.totalorder %s151_s21, %s151_s21 }
   0xb   :  { %p158_p6 = por %p157_p5, %p156_p4 }
   0xd   :  { %p159_p7 = pnand %p158_p6, %p152_p3 }
   0xf   :  { %162 = shalt.err (!%p159_p7)
}
  0x10   :  { %19 = dma.hbm_to_vmem [thread:$0]  %s243_s0, 256, %s17_s13, [#allocation3]  }
  0x11   :  { %185 = dma.done.wait [#allocation3], 256  }
  0x12   :  { %186 = vsyncadd [#allocation3], 4294967040  ;;  %v190_v0 = vmov 0.0   ;;  %v191_v1 = vmov 0   ;;  %v28_v2 = vld [vmem:[#allocation2 + $0x8] sm:$0xff]  ;;  %v27_v3 = vld [vmem:[#allocation2] sm:$0xff] }
  0x13   :  { %104 = vmatprep.mubr.f32.mxu0 %v190_v0  ;;  %140 = vset.pattern.permute.xlu0 %v191_v1  ;;  %v29_v4 = vld [vmem:[%s244_s1] sm:$0xff]  ;;  %vm36_vm0 = vcmask 64512   ;;  %s192_s0 = smov [#allocation5]  }
  0x14   :  { %40 = vmatprep.subr.mxu0 %v28_v2  ;;  %v30_v5 = vld [vmem:[%s245_s2] sm:$0xff]  ;;  %s126_s28 = sshll.u32 %s192_s0, 4  ;;  %s127_s28 = int_to_ptr.vmem [resolvable:$true] %s126_s28 }
  0x15   :  { %41 = vmatpush1.msra.mxu0 %v27_v3  ;;  %33 = vperm.xlu0 %140, %v30_v5   ;;  %s163_s1 = scalar_lea.vmem %s127_s28, 256  ;;  %p168_p9 = scmp.lt.s32.totalorder %s127_s28, %s127_s28 }
  0x16   :  { %135 = vmatmul.mubr.msk.f32.vlgmr.msra.gmra.mrb[0].mxu0 %vm36_vm0, %v29_v4  ;;  %p164_p8 = scmp.ne.s32.totalorder %s127_s28, %s163_s1  ;;  %p169_p10 = scmp.lt.s32.totalorder %s163_s1, %s163_s1 }
  0x18   :  { %p170_p11 = por %p169_p10, %p168_p9 }
  0x1a   :  { %p171_p12 = pnand %p170_p11, %p164_p8 }
  0x94   :  { %v34_v6 = vpop.permute.xlu0 %33 }
  0xe9   :  { %v106_v7 = vpop.f32.mrb[0].mxu0 }
  0xea   :  { %v107_v8 = vadd.f32 %v106_v7, %v34_v6  ;;  %v108_v9 = vpop.f32.mrb[1].mxu0 }
  0xeb   :  { %v109_v10 = vadd.f32 %v108_v9, %v34_v6 }
  0xed   :  { %v111_v11 = vadd.f32 %v109_v10, %v107_v8 }
  0xef   :  { %112 = vadd.xlane.f32.xlu0 %v111_v11 }
 0x17c   :  { %v113_v12 = vpop.xlane.xlu0 %112 }
 0x17d   :  { %v115_v13 = vmul.f32 0.00390625, %v113_v12 }
 0x17f   :  { %v116_v14 = vmul.f32 %v115_v13, %v107_v8  ;;  %v117_v15 = vmul.f32 %v115_v13, %v109_v10 }
 0x181   :  { %118 = vst [vmem:[#allocation5] sm:$0xff] %v116_v14  ;;  %119 = vst [vmem:[#allocation5 + $0x8] sm:$0xff] %v117_v15 }
 0x182   :  { %174 = shalt.err (!%p171_p12)
}
 0x183   :  { %s175_s30 = scalar_lea.hbm %s246_s3, 256 }
 0x184   :  { %p176_p13 = scmp.ne.s32.totalorder %s246_s3, %s175_s30  ;;  %p179_p0 = scmp.lt.u32.totalorder %s175_s30, %s246_s3 }
 0x186   :  { %p181_p1 = pnand %p179_p0, %p176_p13 }
 0x188   :  { %184 = shalt.err (!%p181_p1)
}
 0x189   :  { %129 = dma.vmem_to_hbm [thread:$0]  %s127_s28, 256, %s246_s3, [#allocation4]  }
 0x18a   :  { %187 = dma.done.wait [#allocation4], 256  }
 0x18b   :  { %188 = vsyncadd [#allocation4], 4294967040 }
 0x18c   :  { %133 = vsyncpa [#allocation3], 1 }
 0x18d   :  { %134 = vsyncpa [#allocation4], 1 }

</bundles_post_ra>
